<compile_context>
chip_gen: v6e
topology: v6e:2x2x1
jax: 0.10.0
libtpu: 0.0.40
codegen_flags: <defaults>
</compile_context>

<pallas_src>
import jax
import jax.numpy as jnp
from jax.experimental import pallas as pl
from jax.experimental.pallas import tpu as pltpu

BN_EPS = 1e-5


def dgdt_kernel(x_ref, w1_ref, params_ref, w2_ref, o_ref):
    # Cast x to bf16 at the MXU boundary only (VPU pack, hidden under DMA).
    x = x_ref[...].astype(jnp.bfloat16)

    # fc1: (B, hdim)bf16 @ (hdim, hidden_pad)bf16 -> f32 on the MXU.
    # fc1 bias intentionally omitted: it cancels against the BN batch mean.
    h = jnp.dot(x, w1_ref[...], preferred_element_type=jnp.float32)

    # BatchNorm1d, training mode: biased batch stats over the batch axis.
    mean = jnp.mean(h, axis=0, keepdims=True)
    diff = h - mean
    var = jnp.mean(diff * diff, axis=0, keepdims=True)

    # Packed params: row 0 = gamma, row 1 = beta, row 2 = b2 (static slices).
    gamma = params_ref[0:1, :]
    beta = params_ref[1:2, :]
    b2 = params_ref[2:3, :]

    scale = gamma * jax.lax.rsqrt(var + BN_EPS)       # (1, hidden_pad)
    shift = beta - mean * scale                       # (1, hidden_pad)

    # BN affine + ReLU (padded cols: scale=0, shift=0 -> exactly 0).
    h = jnp.maximum(h * scale + shift, 0.0)

    # fc3: bf16 operands, f32 accumulation, then bias.
    o_ref[...] = jnp.dot(h.astype(jnp.bfloat16), w2_ref[...],
                         preferred_element_type=jnp.float32) + b2


def dgdt_net(x, w1_bf16, params, w2_bf16):
    """Fused forward.

    x: (N, B, hdim) f32 — N independent batches (BN stats per batch), or
       (B, hdim) for a single batch.
    w1_bf16: (hdim, hidden_pad) bf16; w2_bf16: (hidden_pad, outdim) bf16.
    params: (8, hidden_pad) f32, rows 0/1/2 = gamma / beta / b2.
    """
    single = (x.ndim == 2)
    if single:
        x = x[None]
    N, B, hdim = x.shape
    hidden_pad = w1_bf16.shape[1]
    outdim = w2_bf16.shape[1]

    flops = N * 2 * B * (hdim * hidden_pad + hidden_pad * outdim)
    bytes_accessed = (
        x.size * 4 + N * B * outdim * 4            # streamed activations
        + w1_bf16.size * 2 + w2_bf16.size * 2      # weights loaded once
        + params.size * 4
    )

    out = pl.pallas_call(
        dgdt_kernel,
        out_shape=jax.ShapeDtypeStruct((N, B, outdim), jnp.float32),
        grid=(N,),
        in_specs=[
            # x streams one (B, hdim) block per grid step.
            pl.BlockSpec((None, B, hdim), lambda i: (i, 0, 0)),
            # Weights / packed params: constant block index -> VMEM-resident,
            # fetched once for the whole grid.
            pl.BlockSpec(w1_bf16.shape, lambda i: (0, 0)),
            pl.BlockSpec(params.shape, lambda i: (0, 0)),
            pl.BlockSpec(w2_bf16.shape, lambda i: (0, 0)),
        ],
        out_specs=pl.BlockSpec((None, B, outdim), lambda i: (i, 0, 0)),
        compiler_params=pltpu.CompilerParams(
            dimension_semantics=("parallel",)),   # 2x on v7x dual-TC
        cost_estimate=pl.CostEstimate(
            flops=flops, transcendentals=N * hidden_pad,
            bytes_accessed=bytes_accessed),
    )(x, w1_bf16, params, w2_bf16)

    return out[0] if single else out


def init_params(key, hdim=128, hidden=216, outdim=256):
    """Logical (unpadded, f32) parameters matching the PyTorch module."""
    k1, k2, k3, k4 = jax.random.split(key, 4)
    lim1 = 1.0 / (hdim ** 0.5)
    lim2 = 1.0 / (hidden ** 0.5)
    w1 = jax.random.uniform(k1, (hdim, hidden), jnp.float32, -lim1, lim1)
    b1 = jax.random.uniform(k2, (1, hidden), jnp.float32, -lim1, lim1)
    gamma = jnp.ones((1, hidden), jnp.float32)   # BatchNorm1d weight init
    beta = jnp.zeros((1, hidden), jnp.float32)   # BatchNorm1d bias init
    w2 = jax.random.uniform(k3, (hidden, outdim), jnp.float32, -lim2, lim2)
    b2 = jax.random.uniform(k4, (1, outdim), jnp.float32, -lim2, lim2)
    return w1, b1, gamma, beta, w2, b2


def prepare_params(w1, b1, gamma, beta, w2, b2, hidden_pad=256):
    """Pad hidden to a lane-dense multiple of 128, cast weights to bf16, and
    pack gamma/beta/b2 into one sublane-aligned (8, hidden_pad) f32 block.

    Pad columns get gamma=0 / beta=0 so they are exactly zero after the BN
    affine and contribute nothing to fc3.  b1 is dropped (cancels with the BN
    batch mean).
    """
    hdim, hidden = w1.shape
    outdim = w2.shape[1]
    assert hidden_pad % 128 == 0 and hidden_pad >= hidden
    # Packing gamma/beta (width hidden_pad) and b2 (width outdim) into one
    # block requires equal widths; true for this module (256 == 256).
    assert outdim == hidden_pad

    pad = hidden_pad - hidden
    w1_p = jnp.pad(w1, ((0, 0), (0, pad))).astype(jnp.bfloat16)
    w2_p = jnp.pad(w2, ((0, pad), (0, 0))).astype(jnp.bfloat16)

    gamma_p = jnp.pad(gamma, ((0, 0), (0, pad)))   # zeros on pad cols
    beta_p = jnp.pad(beta, ((0, 0), (0, pad)))
    params = jnp.zeros((8, hidden_pad), jnp.float32)
    params = params.at[0:1, :].set(gamma_p)
    params = params.at[1:2, :].set(beta_p)
    params = params.at[2:3, :].set(b2)
    return w1_p, params, w2_p


def reference_f32(x, w1, b1, gamma, beta, w2, b2):
    """Pure f32 PyTorch-semantics reference (fc1 bias included)."""
    h = x @ w1 + b1
    mean = jnp.mean(h, axis=0, keepdims=True)
    var = jnp.mean((h - mean) ** 2, axis=0, keepdims=True)
    h = (h - mean) / jnp.sqrt(var + BN_EPS) * gamma + beta
    h = jnp.maximum(h, 0.0)
    return h @ w2 + b2


def reference_bf16(x, w1, b1, gamma, beta, w2, b2):
    """Same math but with the kernel's bf16 MXU-operand quantization."""
    h = jnp.dot(x.astype(jnp.bfloat16), w1.astype(jnp.bfloat16),
                preferred_element_type=jnp.float32) + b1
    mean = jnp.mean(h, axis=0, keepdims=True)
    var = jnp.mean((h - mean) ** 2, axis=0, keepdims=True)
    h = (h - mean) / jnp.sqrt(var + BN_EPS) * gamma + beta
    h = jnp.maximum(h, 0.0)
    return jnp.dot(h.astype(jnp.bfloat16), w2.astype(jnp.bfloat16),
                   preferred_element_type=jnp.float32) + b2


if __name__ == "__main__":
    key = jax.random.PRNGKey(0)
    kx, kp = jax.random.split(key)

    N, B, hdim, hidden, outdim = 4, 8, 128, 216, 256
    x = jax.random.normal(kx, (N, B, hdim), jnp.float32)
    w1, b1, gamma, beta, w2, b2 = init_params(kp, hdim=hdim, hidden=hidden,
                                              outdim=outdim)
    w1_p, params, w2_p = prepare_params(w1, b1, gamma, beta, w2, b2,
                                        hidden_pad=256)

    # Batched (gridded) forward: weights stay VMEM-resident across the grid.
    out = dgdt_net(x, w1_p, params, w2_p)
    out = jax.block_until_ready(out)
    assert out.shape == (N, B, outdim)

    # Single-batch forward (original module semantics).
    out0 = jax.block_until_ready(dgdt_net(x[0], w1_p, params, w2_p))
    assert out0.shape == (B, outdim)
    assert jnp.allclose(out0, out[0], atol=1e-5, rtol=1e-5)

    # Strict check vs a reference using the same bf16 MXU-operand quantization
    # (verifies structure: dropped b1, folded BN affine, zero padding, packed
    # param block, per-instance BN statistics).
    ref_q = jax.vmap(
        lambda xi: reference_bf16(xi, w1, b1, gamma, beta, w2, b2))(x)
    assert jnp.allclose(out, ref_q, atol=2e-3, rtol=2e-3), (
        float(jnp.max(jnp.abs(out - ref_q))))

    # Loose sanity check vs the pure-f32 PyTorch-semantics forward
    # (difference is just bf16 weight/activation rounding).
    ref = jax.vmap(
        lambda xi: reference_f32(xi, w1, b1, gamma, beta, w2, b2))(x)
    assert jnp.allclose(out, ref, atol=5e-2, rtol=5e-2), (
        float(jnp.max(jnp.abs(out - ref))))

    print("KERNEL_OK")
</pallas_src>

<mosaic_0001>
module attributes {stable_mosaic.version = 11 : i64} {
  func.func @dgdt_kernel(%arg0: i32, %arg1: memref<1x8x128xf32, #tpu.memory_space<vmem>>, %arg2: memref<128x256xbf16, #tpu.memory_space<vmem>>, %arg3: memref<8x256xf32, #tpu.memory_space<vmem>>, %arg4: memref<256x256xbf16, #tpu.memory_space<vmem>>, %arg5: memref<1x8x256xf32, #tpu.memory_space<vmem>>) attributes {dimension_semantics = [#tpu.dimension_semantics<parallel>], iteration_bounds = array<i64: 4>, scalar_prefetch = 0 : i64, scratch_operands = 0 : i64, tpu.core_type = #tpu.core_type<tc>, window_params = [{transform_indices = @transform_0, window_bounds = array<i64: 1, 8, 128>}, {pipeline_mode = #tpu.pipeline_mode<synchronous>, transform_indices = @transform_1, window_bounds = array<i64: 128, 256>}, {pipeline_mode = #tpu.pipeline_mode<synchronous>, transform_indices = @transform_2, window_bounds = array<i64: 8, 256>}, {pipeline_mode = #tpu.pipeline_mode<synchronous>, transform_indices = @transform_3, window_bounds = array<i64: 256, 256>}, {transform_indices = @transform_4, window_bounds = array<i64: 1, 8, 256>}]} {
    %c0 = arith.constant 0 : index
    %c0_0 = arith.constant 0 : index
    %c0_1 = arith.constant 0 : index
    %0 = vector.load %arg1[%c0, %c0_0, %c0_1] : memref<1x8x128xf32, #tpu.memory_space<vmem>>, vector<1x8x128xf32>
    %1 = vector.shape_cast %0 : vector<1x8x128xf32> to vector<8x128xf32>
    %2 = arith.truncf %1 : vector<8x128xf32> to vector<8x128xbf16>
    %c0_2 = arith.constant 0 : index
    %c0_3 = arith.constant 0 : index
    %3 = vector.load %arg2[%c0_2, %c0_3] : memref<128x256xbf16, #tpu.memory_space<vmem>>, vector<128x256xbf16>
    %cst = arith.constant dense<0.000000e+00> : vector<8x256xf32>
    %4 = tpu.matmul %2, %3, %cst {dimension_numbers = #tpu.dot_dimension_numbers<[1], [0], [0], [1], [0, 0, 1, 1], [], []>} : vector<8x128xbf16>, vector<128x256xbf16>, vector<8x256xf32> -> vector<8x256xf32>
    %cst_4 = arith.constant dense<0.000000e+00> : vector<256xf32>
    %5 = vector.multi_reduction <add>, %4, %cst_4 [0] : vector<8x256xf32> to vector<256xf32>
    %6 = vector.shape_cast %5 : vector<256xf32> to vector<1x256xf32>
    %cst_5 = arith.constant 8.000000e+00 : f32
    %7 = vector.broadcast %cst_5 : f32 to vector<1x256xf32>
    %8 = arith.divf %6, %7 : vector<1x256xf32>
    %9 = vector.broadcast %8 : vector<1x256xf32> to vector<8x256xf32>
    %10 = arith.subf %4, %9 : vector<8x256xf32>
    %11 = arith.mulf %10, %10 : vector<8x256xf32>
    %cst_6 = arith.constant dense<0.000000e+00> : vector<256xf32>
    %12 = vector.multi_reduction <add>, %11, %cst_6 [0] : vector<8x256xf32> to vector<256xf32>
    %13 = vector.shape_cast %12 : vector<256xf32> to vector<1x256xf32>
    %cst_7 = arith.constant 8.000000e+00 : f32
    %14 = vector.broadcast %cst_7 : f32 to vector<1x256xf32>
    %15 = arith.divf %13, %14 : vector<1x256xf32>
    %c0_8 = arith.constant 0 : index
    %c0_9 = arith.constant 0 : index
    %16 = vector.load %arg3[%c0_8, %c0_9] : memref<8x256xf32, #tpu.memory_space<vmem>>, vector<1x256xf32>
    %c1 = arith.constant 1 : index
    %c0_10 = arith.constant 0 : index
    %17 = vector.load %arg3[%c1, %c0_10] : memref<8x256xf32, #tpu.memory_space<vmem>>, vector<1x256xf32>
    %c2 = arith.constant 2 : index
    %c0_11 = arith.constant 0 : index
    %18 = vector.load %arg3[%c2, %c0_11] : memref<8x256xf32, #tpu.memory_space<vmem>>, vector<1x256xf32>
    %cst_12 = arith.constant 9.99999974E-6 : f32
    %19 = vector.broadcast %cst_12 : f32 to vector<1x256xf32>
    %20 = arith.addf %15, %19 : vector<1x256xf32>
    %21 = math.rsqrt %20 : vector<1x256xf32>
    %22 = arith.mulf %16, %21 : vector<1x256xf32>
    %23 = arith.mulf %8, %22 : vector<1x256xf32>
    %24 = arith.subf %17, %23 : vector<1x256xf32>
    %25 = vector.broadcast %22 : vector<1x256xf32> to vector<8x256xf32>
    %26 = arith.mulf %4, %25 : vector<8x256xf32>
    %27 = vector.broadcast %24 : vector<1x256xf32> to vector<8x256xf32>
    %28 = arith.addf %26, %27 : vector<8x256xf32>
    %cst_13 = arith.constant 0.000000e+00 : f32
    %29 = vector.broadcast %cst_13 : f32 to vector<8x256xf32>
    %30 = arith.maximumf %28, %29 : vector<8x256xf32>
    %31 = arith.truncf %30 : vector<8x256xf32> to vector<8x256xbf16>
    %c0_14 = arith.constant 0 : index
    %c0_15 = arith.constant 0 : index
    %32 = vector.load %arg4[%c0_14, %c0_15] : memref<256x256xbf16, #tpu.memory_space<vmem>>, vector<256x256xbf16>
    %cst_16 = arith.constant dense<0.000000e+00> : vector<8x256xf32>
    %33 = tpu.matmul %31, %32, %cst_16 {dimension_numbers = #tpu.dot_dimension_numbers<[1], [0], [0], [1], [0, 0, 1, 1], [], []>} : vector<8x256xbf16>, vector<256x256xbf16>, vector<8x256xf32> -> vector<8x256xf32>
    %34 = vector.broadcast %18 : vector<1x256xf32> to vector<8x256xf32>
    %35 = arith.addf %33, %34 : vector<8x256xf32>
    %c0_17 = arith.constant 0 : index
    %c0_18 = arith.constant 0 : index
    %c0_19 = arith.constant 0 : index
    %36 = vector.load %arg5[%c0_17, %c0_18, %c0_19] : memref<1x8x256xf32, #tpu.memory_space<vmem>>, vector<1x8x256xf32>
    %37 = vector.shape_cast %36 : vector<1x8x256xf32> to vector<8x256xf32>
    %38 = vector.shape_cast %35 : vector<8x256xf32> to vector<1x8x256xf32>
    tpu.vector_store %arg5[%c0_17, %c0_18, %c0_19], %38 {strides = array<i32>} : memref<1x8x256xf32, #tpu.memory_space<vmem>>, vector<1x8x256xf32>,
    return
  }
  func.func @transform_0(%arg0: i32) -> (i32, i32, i32) {
    %c0_i32 = arith.constant 0 : i32
    %c0_i32_0 = arith.constant 0 : i32
    %c0_i32_1 = arith.constant 0 : i32
    return %arg0, %c0_i32, %c0_i32_0 : i32, i32, i32
  }
  func.func @transform_1(%arg0: i32) -> (i32, i32) {
    %c0_i32 = arith.constant 0 : i32
    %c0_i32_0 = arith.constant 0 : i32
    %c0_i32_1 = arith.constant 0 : i32
    return %c0_i32, %c0_i32_0 : i32, i32
  }
  func.func @transform_2(%arg0: i32) -> (i32, i32) {
    %c0_i32 = arith.constant 0 : i32
    %c0_i32_0 = arith.constant 0 : i32
    %c0_i32_1 = arith.constant 0 : i32
    return %c0_i32, %c0_i32_0 : i32, i32
  }
  func.func @transform_3(%arg0: i32) -> (i32, i32) {
    %c0_i32 = arith.constant 0 : i32
    %c0_i32_0 = arith.constant 0 : i32
    %c0_i32_1 = arith.constant 0 : i32
    return %c0_i32, %c0_i32_0 : i32, i32
  }
  func.func @transform_4(%arg0: i32) -> (i32, i32, i32) {
    %c0_i32 = arith.constant 0 : i32
    %c0_i32_0 = arith.constant 0 : i32
    %c0_i32_1 = arith.constant 0 : i32
    return %arg0, %c0_i32, %c0_i32_0 : i32, i32, i32
  }
}

</mosaic_0001>

<bundles_post_ra>
// kernel: tpu_custom_call.1
= control target key start
LH: loop header
LB: loop body
LE: loop exit
PB: predicated region body
PF: predicated region fallthrough
CT: control target
= control target key end

     0   :  { %9 = vsyncpa [#allocation3], 0  ;;  %s1503_s0 = inlined_call_operand.hbm [shape: f32[4,8,128], index: 0, kind: input, shape index: {}]   ;;  %s1504_s1 = inlined_call_operand.hbm [shape: bf16[128,256], index: 1, kind: input, shape index: {}]   ;;  %s1505_s2 = inlined_call_operand.hbm [shape: f32[8,256], index: 2, kind: input, shape index: {}]   ;;  %s1506_s3 = inlined_call_operand.hbm [shape: bf16[256,256], index: 3, kind: input, shape index: {}]   ;;  %s1507_s4 = inlined_call_operand.hbm [shape: f32[4,8,256], index: 4, kind: output, shape index: {}]  }
   0x1   :  { %11 = vsyncpa [#allocation3 + $0x1], 0 }
   0x2   :  { %12 = vsyncpa [#allocation6], 0 }
   0x3   :  { %13 = vsyncpa [#allocation9], 0 }
   0x4   :  { %14 = vsyncpa [#allocation4], 0 }
   0x5   :  { %16 = vsyncpa [#allocation4 + $0x1], 0  ;;  %s1306_s15 = smov 0   ;;  %s1308_s16 = smov 0  }
   0x6   :  { %s1310_s17 = smov 0   ;;  %s1312_s18 = smov 0  }
   0x7 LB: > { %s1327_s19 = sadd.s32 4294967295, %s1270_s18   ;;  %s867_s20 = sadd.s32 4294967294, %s1270_s18   ;;  %s1270_s18 = sphi %s1312_s18, %s1530_s18   ;;  %s1266_s17 = sphi %s1310_s17, %s1529_s17   ;;  %s1262_s16 = sphi %s1308_s16, %s1528_s16   ;;  %s1258_s15 = sphi %s1306_s15, %s1527_s15  }
   0x8   : > { %p42_p0 = scmp.ne.s32.totalorder %s1262_s16, %s1258_s15  ;;  %p1508_p1 = scmp.eq.s32.totalorder %s1327_s19, 0 }
   0x9   : > { %p135_p3 = scmp.eq.s32.totalorder %s867_s20, 3  ;;  %p868_p5 = scmp.ge.s32.totalorder %s1270_s18, 1 }
   0xa   : > { %p1336_p4 = por %p1508_p1, %p42_p0  ;;  %p142_p7 = scmp.lt.s32.totalorder %s1270_s18, 5 }
   0xb   : > { %p1341_p6 = por %p135_p3, %p42_p0  ;;  %s1272_s24 = smov [#allocation5]  }
   0xc   : > { %s1512_s21 = scalar_select %p1336_p4, 1, 0 }
   0xd   : > { %s1513_s22 = scalar_select %p1341_p6, 1, 0 }
   0xe   : > { %p1346_p8 = pnand %p868_p5, %p142_p7  ;;  %s154_s25 = sshll.u32 %s1272_s24, 4  ;;  %s155_s25 = int_to_ptr.vmem [resolvable:$true] %s154_s25 }
   0xf   : > { %s1273_s27 = smov [#allocation7]   ;;  %s1274_s29 = smov [#allocation8]  }
  0x10   : > { %s1514_s23 = scalar_select %p1346_p8, 1, 0 }
  0x11   : > { %p951_p9 = pneg %p1346_p8  ;;  %s168_s28 = sshll.u32 %s1273_s27, 4  ;;  %s169_s28 = int_to_ptr.vmem [resolvable:$true] %s168_s28 }
  0x12   : > { %s178_s30 = sshll.u32 %s1274_s29, 4  ;;  %s1103_s5 = scalar_lea.vmem %s155_s25, 2048  ;;  %s179_s30 = int_to_ptr.vmem [resolvable:$true] %s178_s30 }
  0x13   : > { %p1354_p10 = pnand %p951_p9, %p1508_p1  ;;  %p1104_p12 = scmp.ne.s32.totalorder %s155_s25, %s1103_s5 }
  0x14   : > { %p1111_p3 = scmp.lt.s32.totalorder %s155_s25, %s155_s25  ;;  %p1112_p5 = scmp.lt.s32.totalorder %s1103_s5, %s1103_s5 }
  0x15   : > { %p1094_p11 = pneg %p1354_p10 }
  0x16   : > { %p1113_p7 = por %p1112_p5, %p1111_p3 }
  0x17   : > { %p1106_p13 = pnand %p1104_p12, %p1094_p11 }
  0x19   : > { %p1107_p0 = pneg %p1106_p13 }
  0x1b   : > { %p1114_p9 = pnand %p1113_p7, %p1107_p0 }
  0x1d   : > { %1117 = shalt.err (!%p1114_p9)
}
  0x1e   : > { %s1275_s6 = smov 128   ;;  %s1276_s7 = smov 8  }
  0x1f   : > { %954 = dma.hbm_to_vmem [thread:$0]  (!%p1354_p10), %s1504_s1, 2048, %s155_s25, [#allocation6], %s1275_s6, %s1275_s6, %s1276_s7  }
  0x20   : > { %s1129_s10 = scalar_lea.vmem %s169_s28, 256  ;;  %p1137_p2 = scmp.lt.s32.totalorder %s169_s28, %s169_s28 }
  0x21   : > { %p1130_p1 = scmp.ne.s32.totalorder %s169_s28, %s1129_s10  ;;  %p1138_p6 = scmp.lt.s32.totalorder %s1129_s10, %s1129_s10 }
  0x23   : > { %p1132_p12 = pnand %p1130_p1, %p1094_p11  ;;  %p1139_p3 = por %p1138_p6, %p1137_p2 }
  0x25   : > { %p1133_p13 = pneg %p1132_p12 }
  0x27   : > { %p1140_p0 = pnand %p1139_p3, %p1133_p13 }
  0x29   : > { %1143 = shalt.err (!%p1140_p0)
}
  0x2a   : > { %957 = dma.hbm_to_vmem [thread:$0]  (!%p1354_p10), %s1505_s2, 256, %s169_s28, [#allocation6]  }
  0x2b   : > { %s1155_s13 = scalar_lea.vmem %s179_s30, 4096  ;;  %p1163_p9 = scmp.lt.s32.totalorder %s179_s30, %s179_s30 }
  0x2c   : > { %p1156_p5 = scmp.ne.s32.totalorder %s179_s30, %s1155_s13  ;;  %p1164_p12 = scmp.lt.s32.totalorder %s1155_s13, %s1155_s13 }
  0x2e   : > { %p1158_p7 = pnand %p1156_p5, %p1094_p11  ;;  %p1165_p4 = por %p1164_p12, %p1163_p9 }
  0x30   : > { %p1159_p1 = pneg %p1158_p7 }
  0x32   : > { %p1166_p2 = pnand %p1165_p4, %p1159_p1 }
  0x34   : > { %1169 = shalt.err (!%p1166_p2)
}
  0x35   : > { %960 = dma.hbm_to_vmem [thread:$0]  (!%p1354_p10), %s1506_s3, 4096, %s179_s30, [#allocation9], %s1275_s6, %s1275_s6, %s1276_s7  }
  0x36   : > { %s1385_s24 = sadd.s32 1, %s1270_s18   ;;  %s29_s26 = sadd.s32 1, %s1266_s17 }
  0x37   : > { %s26_s25 = ssub.s32 %s1270_s18, %s1385_s24  ;;  %p36_p6 = scmp.ne.s32.totalorder %s1266_s17, %s1262_s16 }
  0x38   : > { %p27_p4 = scmp.eq.s32.totalorder %s26_s25, 0  ;;  %p37_p11 = scmp.eq.s32.totalorder %s1270_s18, 0 }
  0x39   : > { %p972_p13 = scmp.lt.s32.totalorder %s1270_s18, 4  ;;  %p1516_p0 = scmp.eq.s32.totalorder %s1327_s19, 3 }
  0x3a   : > { %s1395_s27 = scalar_select %p27_p4, %s1266_s17, %s29_s26  }
  0x3b   : > { %p38_p3 = por %p37_p11, %p36_p6  ;;  %p1399_p5 = por %p1516_p0, %p36_p6 }
  0x3c   : > { %s192_s29 = sand.u32 1, %s1266_s17   ;;  %s874_s5 = sshll.u32 %s1270_s18, 7 }
  0x3d   : > { %s1517_s28 = scalar_select %p1399_p5, 1, 0 }
  0x3e   : > { %s873_s30 = sshll.u32 %s192_s29, 3  ;;  %s1408_s8 = scalar_lea.hbm %s1503_s0, %s874_s5 }
  0x3f   : > { %s196_s9 = scalar_lea.vmem [#allocation2], %s873_s30  ;;  %p1410_p10 = pnand %p972_p13, %p38_p3 }
  0x40   : > { %s203_s10 = sshll.u32 %s196_s9, 4  ;;  %s193_s12 = scalar_lea.sflag [#allocation3], %s192_s29  ;;  %s204_s10 = int_to_ptr.vmem [resolvable:$true] %s203_s10 }
  0x41   : > { %s1170_s13 = scalar_lea.hbm %s1408_s8, 128  ;;  %p1172_p1 = pneg %p1410_p10 }
  0x42   : > { %p1171_p7 = scmp.ne.s32.totalorder %s1408_s8, %s1170_s13  ;;  %s1175_s25 = scalar_lea.hbm %s1503_s0, 512 }
  0x43   : > { %p1176_p2 = scmp.lt.s32.totalorder %s1408_s8, %s1503_s0  ;;  %p1177_p4 = scmp.lt.s32.totalorder %s1175_s25, %s1170_s13 }
  0x44   : > { %p1173_p9 = pnand %p1172_p1, %p1171_p7 }
  0x45   : > { %p1178_p6 = por %p1177_p4, %p1176_p2 }
  0x46   : > { %p1174_p12 = pneg %p1173_p9 }
  0x48   : > { %p1179_p11 = pnand %p1178_p6, %p1174_p12 }
  0x4a   : > { %1182 = shalt.err (!%p1179_p11)
}
  0x4b   : > { %s1183_s30 = scalar_lea.vmem %s204_s10, 128  ;;  %s1277_s29 = smov [#allocation2]  }
  0x4c   : > { %p1184_p13 = scmp.ne.s32.totalorder %s204_s10, %s1183_s30  ;;  %s1188_s6 = sshll.u32 %s1277_s29, 4  ;;  %s1189_s6 = int_to_ptr.vmem [resolvable:$false] %s1188_s6 }
  0x4d   : > { %s1190_s7 = scalar_lea.vmem %s1189_s6, 256  ;;  %p1191_p7 = scmp.lt.s32.totalorder %s204_s10, %s1189_s6 }
  0x4e   : > { %p1186_p3 = pnand %p1184_p13, %p1172_p1  ;;  %p1192_p9 = scmp.lt.s32.totalorder %s1190_s7, %s1183_s30 }
  0x50   : > { %p1187_p0 = pneg %p1186_p3  ;;  %p1193_p5 = por %p1192_p9, %p1191_p7 }
  0x52   : > { %p1194_p8 = pnand %p1193_p5, %p1187_p0 }
  0x54   : > { %1197 = shalt.err (!%p1194_p8)
}
  0x55   : > { %964 = dma.hbm_to_vmem [thread:$0]  (!%p1410_p10), %s1408_s8, 128, %s204_s10, %s193_s12  }
  0x56   : > { %p1519_p12 = scmp.ne.s32.totalorder %s1514_s23, 0 }
  0x57   : > { %s1431_s9 = sand.u32 (!%p1519_p12), 1, %s1262_s16   ;;  %p1520_p1 = scmp.ne.s32.totalorder (!%p1519_p12), %s1512_s21, 0 }
  0x58   : > { %212 = sbr.rel (%p1519_p12) target bundleno = 617 (0x269), region = 36  ;;  %s876_s13 = sshll.u32 (!%p1519_p12), %s1431_s9, 3 }
  0x59   : > { %s215_s14 = scalar_lea.sflag (!%p1519_p12), [#allocation3], %s1431_s9  ;;  %s1435_s20 = scalar_lea.vmem (!%p1519_p12), [#allocation2], %s876_s13 }
  0x5d   : > { %1241 = dma.done.wait (%p1520_p1), %s215_s14, 128  }
  0x5e   : > { %1243 = vsyncadd (%p1520_p1), %s215_s14, 4294967168  ;;  %p1521_p8 = scmp.eq.s32.totalorder %s1327_s19, 0 }
  0x60   : > { %1245 = dma.done.wait (%p1521_p8), [#allocation6], 2304   ;;  %p1522_p5 = pmov %p1521_p8 }
  0x62   : > { %1247 = vsyncadd (%p1522_p5), [#allocation6], 4294964992  ;;  %p1523_p10 = pmov %p1522_p5 }
  0x63   : > { %p1524_p2 = pmov %p1522_p5 }
  0x64   : > { %1249 = dma.done.wait (%p1523_p10), [#allocation9], 4096  }
  0x65   : > { %1251 = vsyncadd (%p1524_p2), [#allocation9], 4294963200  ;;  %v1278_v0 = vmov 0   ;;  %v1016_v1 = vld [vmem:[#allocation5 + $0x74] ss:$8 sps:$4 sm:$0xff]   ;;  %s880_s21 = sshll.u32 %s1431_s9, 4 }
  0x66   : > { %386 = vmatprep.mubr.bf16.mxu0 %v1278_v0  ;;  %v1018_v2 = vld [vmem:[#allocation5 + $0x70] ss:$8 sps:$4 sm:$0xff]   ;;  %354 = vmatprep.subr.bf16.mxu0 %v1016_v1  ;;  %v1019_v3 = vld [vmem:[#allocation5 + $0x64] ss:$8 sps:$4 sm:$0xff]   ;;  %v1021_v4 = vld [vmem:[#allocation5 + $0x60] ss:$8 sps:$4 sm:$0xff]  }
  0x67   : > { %355 = vmatpush1.bf16.msra.mxu0 %v1018_v2  ;;  %v1022_v5 = vld [vmem:[#allocation5 + $0x54] ss:$8 sps:$4 sm:$0xff]   ;;  %v1024_v6 = vld [vmem:[#allocation5 + $0x50] ss:$8 sps:$4 sm:$0xff]   ;;  %v1025_v7 = vld [vmem:[#allocation5 + $0x44] ss:$8 sps:$4 sm:$0xff]  }
  0x68   : > { %356 = vmatprep.subr.bf16.mxu0 %v1019_v3  ;;  %v1027_v8 = vld [vmem:[#allocation5 + $0x40] ss:$8 sps:$4 sm:$0xff]   ;;  %v1028_v9 = vld [vmem:[#allocation5 + $0x34] ss:$8 sps:$4 sm:$0xff]   ;;  %v1030_v10 = vld [vmem:[#allocation5 + $0x30] ss:$8 sps:$4 sm:$0xff]  }
  0x69   : > { %v1031_v11 = vld [vmem:[#allocation5 + $0x24] ss:$8 sps:$4 sm:$0xff]   ;;  %v1033_v12 = vld [vmem:[#allocation5 + $0x20] ss:$8 sps:$4 sm:$0xff]   ;;  %v1034_v13 = vld [vmem:[#allocation5 + $0x14] ss:$8 sps:$4 sm:$0xff]  }
  0x6a   : > { %v1036_v14 = vld [vmem:[#allocation5 + $0x10] ss:$8 sps:$4 sm:$0xff]   ;;  %v1037_v15 = vld [vmem:[#allocation5 + $0x4] ss:$8 sps:$4 sm:$0xff]   ;;  %v1039_v16 = vld [vmem:[#allocation5] ss:$8 sps:$4 sm:$0xff]  }
  0x6b   : > { %357 = vmatpush1.bf16.msra.mxu0 %v1021_v4  ;;  %v256_v17 = vld [vmem:[%s1435_s20] sm:$0xff]  ;;  %v1040_v19 = vld [vmem:[#allocation8 + $0x74] ss:$8 sps:$4 sm:$0xff]   ;;  %v1042_v20 = vld [vmem:[#allocation8 + $0x70] ss:$8 sps:$4 sm:$0xff]   ;;  %s934_s23 = sshll.u32 %s1327_s19, 8 }
  0x6c   : > { %358 = vmatprep.subr.bf16.mxu0 %v1022_v5  ;;  %v257_v18 = vpack.c.bf16 %v256_v17, %v256_v17  ;;  %710 = vmatprep.subr.bf16.mxu1 %v1040_v19  ;;  %v1043_v21 = vld [vmem:[#allocation8 + $0x64] ss:$8 sps:$4 sm:$0xff]   ;;  %v1045_v22 = vld [vmem:[#allocation8 + $0x60] ss:$8 sps:$4 sm:$0xff]   ;;  %v1046_v23 = vld [vmem:[#allocation8 + $0x54] ss:$8 sps:$4 sm:$0xff]   ;;  %s1461_s25 = scalar_lea.hbm %s1507_s4, %s934_s23 }
  0x6d   : > { %711 = vmatpush1.bf16.msra.mxu1 %v1042_v20  ;;  %v1048_v24 = vld [vmem:[#allocation8 + $0x50] ss:$8 sps:$4 sm:$0xff]   ;;  %v1049_v25 = vld [vmem:[#allocation8 + $0x44] ss:$8 sps:$4 sm:$0xff]   ;;  %v1051_v26 = vld [vmem:[#allocation8 + $0x40] ss:$8 sps:$4 sm:$0xff]  }
  0x6e   : > { %712 = vmatprep.subr.bf16.mxu1 %v1043_v21  ;;  %v1052_v27 = vld [vmem:[#allocation8 + $0x34] ss:$8 sps:$4 sm:$0xff]   ;;  %v1054_v28 = vld [vmem:[#allocation8 + $0x30] ss:$8 sps:$4 sm:$0xff]   ;;  %v1055_v29 = vld [vmem:[#allocation8 + $0x24] ss:$8 sps:$4 sm:$0xff]  }
  0x6f   : > { %359 = vmatpush1.bf16.msra.mxu0 %v1024_v6  ;;  %v1057_v30 = vld [vmem:[#allocation8 + $0x20] ss:$8 sps:$4 sm:$0xff]   ;;  %v1058_v31 = vld [vmem:[#allocation8 + $0x14] ss:$8 sps:$4 sm:$0xff]   ;;  %v1060_v32 = vld [vmem:[#allocation8 + $0x10] ss:$8 sps:$4 sm:$0xff]  }
  0x70   : > { %360 = vmatprep.subr.bf16.mxu0 %v1025_v7  ;;  %v1061_v33 = vld [vmem:[#allocation8 + $0x4] ss:$8 sps:$4 sm:$0xff]   ;;  %v1063_v34 = vld [vmem:[#allocation8] ss:$8 sps:$4 sm:$0xff]   ;;  %v1064_v35 = vld [vmem:[#allocation8 + $0xf4] ss:$8 sps:$4 sm:$0xff]  }
  0x71   : > { %713 = vmatpush1.bf16.msra.mxu1 %v1045_v22  ;;  %v1066_v36 = vld [vmem:[#allocation8 + $0xf0] ss:$8 sps:$4 sm:$0xff]   ;;  %v1067_v37 = vld [vmem:[#allocation8 + $0xe4] ss:$8 sps:$4 sm:$0xff]   ;;  %v1069_v38 = vld [vmem:[#allocation8 + $0xe0] ss:$8 sps:$4 sm:$0xff]  }
  0x72   : > { %714 = vmatprep.subr.bf16.mxu1 %v1046_v23  ;;  %v1070_v39 = vld [vmem:[#allocation8 + $0xd4] ss:$8 sps:$4 sm:$0xff]   ;;  %v1072_v40 = vld [vmem:[#allocation8 + $0xd0] ss:$8 sps:$4 sm:$0xff]   ;;  %v1073_v41 = vld [vmem:[#allocation8 + $0xc4] ss:$8 sps:$4 sm:$0xff]  }
  0x73   : > { %361 = vmatpush1.bf16.msra.mxu0 %v1027_v8  ;;  %v1075_v42 = vld [vmem:[#allocation8 + $0xc0] ss:$8 sps:$4 sm:$0xff]   ;;  %v1076_v43 = vld [vmem:[#allocation8 + $0xb4] ss:$8 sps:$4 sm:$0xff]   ;;  %v1078_v44 = vld [vmem:[#allocation8 + $0xb0] ss:$8 sps:$4 sm:$0xff]  }
  0x74   : > { %362 = vmatprep.subr.bf16.mxu0 %v1028_v9  ;;  %v1079_v45 = vld [vmem:[#allocation8 + $0xa4] ss:$8 sps:$4 sm:$0xff]   ;;  %v1081_v46 = vld [vmem:[#allocation8 + $0xa0] ss:$8 sps:$4 sm:$0xff]   ;;  %v1082_v47 = vld [vmem:[#allocation8 + $0x94] ss:$8 sps:$4 sm:$0xff]  }
  0x75   : > { %715 = vmatpush1.bf16.msra.mxu1 %v1048_v24  ;;  %v1084_v48 = vld [vmem:[#allocation8 + $0x90] ss:$8 sps:$4 sm:$0xff]   ;;  %v1085_v49 = vld [vmem:[#allocation8 + $0x84] ss:$8 sps:$4 sm:$0xff]   ;;  %v1087_v50 = vld [vmem:[#allocation8 + $0x80] ss:$8 sps:$4 sm:$0xff]  }
  0x76   : > { %716 = vmatprep.subr.bf16.mxu1 %v1049_v25  ;;  %v1279_v25 = vmov 1966171168   ;;  %s254_s8 = scalar_lea.vmem [#allocation10], %s880_s21  ;;  %s754_s19 = scalar_lea.sflag [#allocation4], %s1431_s9 }
  0x77   : > { %363 = vmatpush1.bf16.msra.mxu0 %v1030_v10  ;;  %s768_s10 = sshll.u32 %s254_s8, 4  ;;  %p1525_p6 = scmp.ne.s32.totalorder %s1517_s28, 0  ;;  %s1463_s10 = int_to_ptr.vmem [resolvable:$true] %s768_s10 }
  0x78   : > { %364 = vmatprep.subr.bf16.mxu0 %v1031_v11  ;;  %s1198_s26 = scalar_lea.vmem %s1463_s10, 256  ;;  %s1280_s5 = smov [#allocation10]  }
  0x79   : > { %717 = vmatpush1.bf16.msra.mxu1 %v1051_v26  ;;  %v441_v26 = vunpack.c.l.s4 %v1279_v25  ;;  %p1199_p4 = scmp.ne.s32.totalorder %s1463_s10, %s1198_s26  ;;  %s1202_s30 = sshll.u32 %s1280_s5, 4  ;;  %s1203_s30 = int_to_ptr.vmem [resolvable:$false] %s1202_s30 }
  0x7a   : > { %718 = vmatprep.subr.bf16.mxu1 %v1052_v27  ;;  %v443_v27 = vlaneseq  ;;  %s1204_s29 = scalar_lea.vmem %s1203_s30, 512  ;;  %p1205_p3 = scmp.lt.s32.totalorder %s1463_s10, %s1203_s30 }
  0x7b   : > { %365 = vmatpush1.bf16.msra.mxu0 %v1033_v12  ;;  %p1200_p11 = pnand %p1199_p4, %p1525_p6  ;;  %p1206_p0 = scmp.lt.s32.totalorder %s1204_s29, %s1198_s26 }
  0x7c   : > { %366 = vmatprep.subr.bf16.mxu0 %v1034_v13 }
  0x7d   : > { %719 = vmatpush1.bf16.msra.mxu1 %v1054_v28  ;;  %v442_v28 = vunpack.c.0.s8 %v441_v26  ;;  %p1201_p13 = pneg %p1200_p11  ;;  %p1207_p7 = por %p1206_p0, %p1205_p3 }
  0x7e   : > { %720 = vmatprep.subr.bf16.mxu1 %v1055_v29  ;;  %v444_v29 = vshrl.u32 %v443_v27, 7 }
  0x7f   : > { %367 = vmatpush1.bf16.msra.mxu0 %v1036_v14  ;;  %p1208_p9 = pnand %p1207_p7, %p1201_p13 }
  0x80   : > { %368 = vmatprep.subr.bf16.mxu0 %v1037_v15 }
  0x81   : > { %721 = vmatpush1.bf16.msra.mxu1 %v1057_v30 }
  0x82   : > { %722 = vmatprep.subr.bf16.mxu1 %v1058_v31  ;;  %v445_v31 = vsub.s32 %v442_v28, %v444_v29 }
  0x83   : > { %369 = vmatpush1.bf16.msra.mxu0 %v1039_v16 }
  0x85   : > { %723 = vmatpush1.bf16.msra.mxu1 %v1060_v32 }
  0x86   : > { %387 = vmatmul.mubr.bf16.vlgmr.msra.gmra.mxu0 %v257_v18  ;;  %724 = vmatprep.subr.bf16.mxu1 %v1061_v33 }
  0x89   : > { %725 = vmatpush1.bf16.msra.mxu1 %v1063_v34 }
  0x8a   : > { %726 = vmatprep.subr.bf16.mxu1 %v1064_v35  ;;  %v428_v35 = vld [vmem:[#allocation7] ss:$8 sm:$0x3] }
  0x8d   : > { %727 = vmatpush2.bf16.msra.mxu1 %v1066_v36 }
  0x8e   : > { %728 = vmatprep.subr.bf16.mxu1 %v1067_v37  ;;  %v459_v37 = vsub.s32 0, %v444_v29 }
  0x91   : > { %729 = vmatpush2.bf16.msra.mxu1 %v1069_v38  ;;  %v463_v38 = vsub.s32 1, %v444_v29 }
  0x92   : > { %730 = vmatprep.subr.bf16.mxu1 %v1070_v39 }
  0x95   : > { %731 = vmatpush2.bf16.msra.mxu1 %v1072_v40 }
  0x96   : > { %732 = vmatprep.subr.bf16.mxu1 %v1073_v41 }
  0x99   : > { %733 = vmatpush2.bf16.msra.mxu1 %v1075_v42 }
  0x9a   : > { %734 = vmatprep.subr.bf16.mxu1 %v1076_v43 }
  0x9d   : > { %735 = vmatpush2.bf16.msra.mxu1 %v1078_v44 }
  0x9e   : > { %736 = vmatprep.subr.bf16.mxu1 %v1079_v45 }
  0xa1   : > { %737 = vmatpush2.bf16.msra.mxu1 %v1081_v46  ;;  %v430_v46 = vld [vmem:[#allocation7 + $0x1] ss:$8 sm:$0x3] }
  0xa2   : > { %738 = vmatprep.subr.bf16.mxu1 %v1082_v47 }
  0xa5   : > { %739 = vmatpush2.bf16.msra.mxu1 %v1084_v48 }
  0xa6   : > { %740 = vmatprep.subr.bf16.mxu1 %v1085_v49 }
  0xa9   : > { %741 = vmatpush2.bf16.msra.mxu1 %v1087_v50 }
 0x146   : > { %v1450_v51 = vpop.f32.mrf.mxu0 }
 0x147   : > { %v395_v52 = vrot.slane %v1450_v51, 4 }
 0x148   : > { %v390_v53 = vpop.f32.mrf.mxu0 }
 0x149   : > { %v396_v54 = vadd.f32 %v395_v52, %v1450_v51  ;;  %v401_v55 = vrot.slane %v390_v53, 4 }
 0x14a   : > { %v392_v56 = vpop.f32.mrf.mxu0 }
 0x14b   : > { %v397_v57 = vrot.slane %v396_v54, 2  ;;  %v402_v58 = vadd.f32 %v401_v55, %v390_v53 }
 0x14c   : > { %v393_v59 = vpop.f32.mrf.mxu0 }
 0x14d   : > { %v398_v60 = vadd.f32 %v397_v57, %v396_v54  ;;  %v403_v61 = vrot.slane %v402_v58, 2 }
 0x14f   : > { %v399_v62 = vrot.slane %v398_v60, 1  ;;  %v404_v63 = vadd.f32 %v403_v61, %v402_v58  ;;  %v432_v61 = vld [vmem:[#allocation7 + $0x2] ss:$8 sm:$0x3] }
 0x151   : > { %v400_v0 = vadd.f32 %v399_v62, %v398_v60  ;;  %v405_v1 = vrot.slane %v404_v63, 1  ;;  %v543_v62 = vrot.slane %v432_v61, %v459_v37 }
 0x153   : > { %v408_v2 = vmul.f32 0.125, %v400_v0  ;;  %v406_v3 = vadd.f32 %v405_v1, %v404_v63  ;;  %v547_v63 = vrot.slane %v432_v61, %v463_v38 }
 0x155   : > { %v410_v4 = vsub.f32 %v1450_v51, %v408_v2  ;;  %v409_v5 = vmul.f32 0.125, %v406_v3 }
 0x157   : > { %v412_v6 = vmul.f32 %v410_v4, %v410_v4  ;;  %v411_v7 = vsub.f32 %v390_v53, %v409_v5 }
 0x159   : > { %v414_v8 = vrot.slane %v412_v6, 4  ;;  %v413_v9 = vmul.f32 %v411_v7, %v411_v7 }
 0x15b   : > { %v415_v10 = vadd.f32 %v414_v8, %v412_v6  ;;  %v420_v11 = vrot.slane %v413_v9, 4 }
 0x15d   : > { %v416_v12 = vrot.slane %v415_v10, 2  ;;  %v421_v13 = vadd.f32 %v420_v11, %v413_v9 }
 0x15f   : > { %v417_v14 = vadd.f32 %v416_v12, %v415_v10  ;;  %v422_v15 = vrot.slane %v421_v13, 2 }
 0x161   : > { %v418_v16 = vrot.slane %v417_v14, 1  ;;  %v423_v17 = vadd.f32 %v422_v15, %v421_v13 }
 0x163   : > { %v419_v18 = vadd.f32 %v418_v16, %v417_v14  ;;  %v424_v19 = vrot.slane %v423_v17, 1 }
 0x165   : > { %v426_v20 = vmul.f32 0.125, %v419_v18  ;;  %v425_v21 = vadd.f32 %v424_v19, %v423_v17 }
 0x167   : > { %v433_v22 = vadd.f32 1e-05, %v426_v20  ;;  %v427_v23 = vmul.f32 0.125, %v425_v21 }
 0x169   : > { %v434_v24 = vadd.f32 1e-05, %v427_v23  ;;  %1088 = vrsqrt.f32 %v433_v22 }
 0x16b   : > { %1090 = vrsqrt.f32 %v434_v24 }
 0x176   : > { %v1089_v30 = vpop.eup %1088 }
 0x178   : > { %v1091_v32 = vpop.eup %1090 }
 0x179   : > { %v439_v33 = vcombine.low %v1089_v30, %v1091_v32 }
 0x17b   : > { %v446_v34 = vrot.slane %v439_v33, %v445_v31 }
 0x17d   : > { %v453_v36 = vrot.slane %v446_v34, %v445_v31 }
 0x17f   : > { %v455_v39 = vmul.f32 %v453_v36, %v428_v35 }
 0x181   : > { %v460_v40 = vrot.slane %v455_v39, %v459_v37  ;;  %v464_v41 = vrot.slane %v455_v39, %v463_v38 }
 0x183   : > { %v467_v42 = vmul.f32 %v460_v40, %v408_v2  ;;  %v468_v43 = vmul.f32 %v464_v41, %v409_v5  ;;  %v489_v49 = vmul.f32 %v464_v41, %v390_v53  ;;  %v488_v52 = vmul.f32 %v460_v40, %v1450_v51 }
 0x185   : > { %v471_v44 = vcombine.low %v467_v42, %v468_v43 }
 0x187   : > { %v478_v45 = vrot.slane %v471_v44, %v445_v31 }
 0x189   : > { %v485_v47 = vrot.slane %v478_v45, %v445_v31 }
 0x18b   : > { %v487_v48 = vsub.f32 %v430_v46, %v485_v47 }
 0x18d   : > { %v498_v50 = vrot.slane %v487_v48, %v463_v38  ;;  %v494_v54 = vrot.slane %v487_v48, %v459_v37 }
 0x18f   : > { %v502_v55 = vadd.f32 %v498_v50, %v489_v49  ;;  %v501_v56 = vadd.f32 %v494_v54, %v488_v52 }
 0x191   : > { %v504_v57 = vmax.f32 %v502_v55, 0.0  ;;  %v503_v58 = vmax.f32 %v501_v56, 0.0 }
 0x193   : > { %v506_v59 = vpack.c.bf16 %v504_v57, %v504_v57  ;;  %v505_v60 = vpack.c.bf16 %v503_v58, %v503_v58 }
 0x195   : > { %742 = vmatprep.mubr.bf16.mxu1 %v506_v59 }
 0x196   : > { %743 = vmatmul.mubr.bf16.vlgmr.msra.gmra.mxu1 %v505_v60 }
 0x256   : > { %v744_v0 = vpop.f32.mrf.mxu1 }
 0x257   : > { %v745_v51 = vadd.f32 %v744_v0, %v543_v62 }
 0x258   : > { %v746_v53 = vpop.f32.mrf.mxu1 }
 0x259   : > { %751 = vst [vmem:[%s254_s8] sm:$0xff] %v745_v51  ;;  %v747_v1 = vadd.f32 %v746_v53, %v547_v63 }
 0x25a   : > { %v748_v2 = vpop.f32.mrf.mxu1 }
 0x25b   : > { %752 = vst [vmem:[%s254_s8 + $0x8] sm:$0xff] %v747_v1 }
 0x25c   : > { %v749_v3 = vpop.f32.mrf.mxu1 }
 0x25d   : > { %1211 = shalt.err (!%p1208_p9)
}
 0x25e   : > { %s1212_s6 = scalar_lea.hbm %s1461_s25, 256  ;;  %s1216_s13 = scalar_lea.hbm %s1507_s4, 1024 }
 0x25f   : > { %p1213_p12 = scmp.ne.s32.totalorder %s1461_s25, %s1212_s6  ;;  %p1217_p5 = scmp.lt.s32.totalorder %s1461_s25, %s1507_s4 }
 0x260   : > { %p1218_p10 = scmp.lt.s32.totalorder %s1216_s13, %s1212_s6 }
 0x261   : > { %p1214_p1 = pnand %p1213_p12, %p1525_p6 }
 0x262   : > { %p1219_p2 = por %p1218_p10, %p1217_p5 }
 0x263   : > { %p1215_p8 = pneg %p1214_p1 }
 0x265   : > { %p1220_p4 = pnand %p1219_p2, %p1215_p8 }
 0x267   : > { %1223 = shalt.err (!%p1220_p4)
}
 0x268   : > { %949 = dma.vmem_to_hbm [thread:$0]  (%p1525_p6), %s1463_s10, 256, %s1461_s25, %s754_s19  }
 0x269 PF: > { %p976_p11 = scmp.ge.s32.totalorder %s1270_s18, 2  ;;  %s780_s21 = sand.u32 1, %s1258_s15  }
 0x26a   : > { %p1526_p13 = scmp.ne.s32.totalorder %s1513_s22, 0  ;;  %s781_s23 = scalar_lea.sflag [#allocation4], %s780_s21 }
 0x26c   : > { %p966_p3 = pnand %p976_p11, %p1526_p13 }
 0x26e   : > { %p967_p0 = pneg %p966_p3 }
 0x270   : > { %1253 = dma.done.wait (%p967_p0), %s781_s23, 256  }
 0x271   : > { %1255 = vsyncadd (%p967_p0), %s781_s23, 4294967040  ;;  %p19_p7 = scmp.ge.s32.totalorder %s1385_s24, 6   ;;  %s1527_s15 = smov %s1262_s16 }
 0x272   : > { %s1528_s16 = smov %s1266_s17  ;;  %s1529_s17 = smov %s1395_s27 }
 0x273   : > { %s1530_s18 = smov %s1385_s24  ;;  %21 = sbr.rel (!%p19_p7) target bundleno = 7 (0x7), region = 95 }
 0x278   :  { %786 = vsyncpa [#allocation3], 1 }
 0x279   :  { %788 = vsyncpa [#allocation3 + $0x1], 1 }
 0x27a   :  { %789 = vsyncpa [#allocation6], 1 }
 0x27b   :  { %790 = vsyncpa [#allocation9], 1 }
 0x27c   :  { %791 = vsyncpa [#allocation4], 1 }
 0x27d   :  { %793 = vsyncpa [#allocation4 + $0x1], 1 }

</bundles_post_ra>
